<compile_context>
chip_gen: v7x
topology: tpu7x:2x2x1
jax: 0.10.0
libtpu: 0.0.40
codegen_flags: <defaults>
</compile_context>

<pallas_src>
import functools
import math

import jax
import jax.numpy as jnp
import numpy as np
from jax.experimental import pallas as pl
from jax.experimental.pallas import tpu as pltpu


def llama_layer_kernel(x_ref, rms1_ref, rms2_ref,
                       wqkv_ref, wo_ref, wgu_ref, wd_ref,
                       cos_ref, sin_ref, mask_ref,
                       o_ref, *, num_heads, head_dim, eps):
    x = x_ref[0]                                   # (S, D) float32
    S, D = x.shape
    H, hd = num_heads, head_dim
    HD = H * hd
    hd2 = hd // 2
    Fh = wd_ref.shape[0]

    def rmsnorm(v, w):
        var = jnp.mean(v * v, axis=-1, keepdims=True)
        return v * jax.lax.rsqrt(var + eps) * w    # w is (1, D), broadcasts

    def mm(a, b):
        # bf16 operands on the MXU, f32 accumulation.
        return jnp.dot(a.astype(jnp.bfloat16), b.astype(jnp.bfloat16),
                       preferred_element_type=jnp.float32)

    def mm_nt(a, b):
        # a @ b.T without materializing the transpose (contract dim 1 of both operands).
        return jax.lax.dot_general(a, b, (((1,), (1,)), ((), ())),
                                   preferred_element_type=jnp.float32)

    def rotate_half_heads(t):
        # t: (S, HD); each head block laid out [even idx | odd idx] -> swap halves per head.
        # TODO(synk): at head_dim >= 128 use pltpu.roll per 128-lane head block instead.
        parts = []
        for h in range(H):
            lo = h * hd
            parts.append(t[:, lo + hd2: lo + hd])
            parts.append(t[:, lo: lo + hd2])
        return jnp.concatenate(parts, axis=-1)

    # ---------------- attention block ----------------
    xn = rmsnorm(x, rms1_ref[...])
    qkv = mm(xn, wqkv_ref[...])                    # (S, 3*HD) f32; 1/sqrt(hd) folded into wq
    q = qkv[:, :HD]
    k = qkv[:, HD:2 * HD]
    v = qkv[:, 2 * HD:]

    cos = cos_ref[...]                             # (S, HD)  [cos | cos] per head, tiled
    sin = sin_ref[...]                             # (S, HD)  [-sin | sin] per head, sign folded
    # Full-width RoPE (two VPU passes), single bf16 cast for the MXU.
    q = (q * cos + rotate_half_heads(q) * sin).astype(jnp.bfloat16)
    k = (k * cos + rotate_half_heads(k) * sin).astype(jnp.bfloat16)
    v = v.astype(jnp.bfloat16)

    mask_bias = mask_ref[...]                      # (S, S) f32 causal bias, precomputed

    # TODO(synk): at production H use lax.fori_loop / a grid axis and flash-tile over KV
    # instead of statically unrolling the head loop.
    ctx_parts = []
    for h in range(H):
        lo, hi = h * hd, (h + 1) * hd
        s = mm_nt(q[:, lo:hi], k[:, lo:hi]) + mask_bias       # (S, S) f32
        s = s - jnp.max(s, axis=-1, keepdims=True)
        p = jnp.exp(s)
        p = p * pl.reciprocal(jnp.sum(p, axis=-1, keepdims=True), approx=True)
        ctx_parts.append(mm(p, v[:, lo:hi]))                  # (S, hd) f32
    ctx = jnp.concatenate(ctx_parts, axis=-1)                 # (S, HD)
    x = x + mm(ctx, wo_ref[...])                              # single full-K output projection

    # ---------------- feed-forward (gate * gelu(up)) ----------------
    xn2 = rmsnorm(x, rms2_ref[...])
    gu = mm(xn2, wgu_ref[...])                                # (S, 2*F), fused gate|up
    gate = gu[:, :Fh]
    up = gu[:, Fh:]
    act = gate * jax.nn.gelu(up, approximate=True)            # tanh GELU -> EUP slot
    x = x + mm(act, wd_ref[...])
    # TODO(synk): dropout (p=0.1) omitted — eval/inference semantics (identity).

    o_ref[0] = x


def prepare_llama_layer(params, *, num_heads, head_dim, seq_len):
    """One-time preprocessing (call once, not per forward step):
    per-head column permutation of wq/wk into halves layout, softmax scale folded into wq,
    fused bf16 weights, full-width RoPE tables (sign-folded sin) and the causal bias."""
    H, hd = num_heads, head_dim
    S = seq_len

    # Per-head column permutation: interleaved (x0,x1,x2,...) -> halves ([evens | odds]).
    # q.k^T is invariant under a shared per-head permutation of wq/wk columns; v / wo keep
    # the original layout, so the layer output is unchanged.
    perm = np.concatenate(
        [np.concatenate([np.arange(h * hd, (h + 1) * hd, 2),
                         np.arange(h * hd + 1, (h + 1) * hd, 2)]) for h in range(H)])
    wq_p = np.asarray(params["wq"])[:, perm] * np.float32(1.0 / math.sqrt(hd))
    wk_p = np.asarray(params["wk"])[:, perm]

    wqkv = jnp.asarray(np.concatenate([wq_p, wk_p, np.asarray(params["wv"])], axis=1),
                       jnp.bfloat16)
    wgu = jnp.asarray(np.concatenate([np.asarray(params["wg"]), np.asarray(params["wu"])],
                                     axis=1), jnp.bfloat16)
    wo = jnp.asarray(params["wo"], jnp.bfloat16)
    wd = jnp.asarray(params["wd"], jnp.bfloat16)

    # RoPE tables in halves layout for one head, tiled across heads to (S, HD).
    inv_freq = 1.0 / (10000.0 ** (np.arange(0, hd, 2, dtype=np.float32) / hd))
    freqs = np.outer(np.arange(S, dtype=np.float32), inv_freq)           # (S, hd/2)
    cos_h = np.concatenate([np.cos(freqs), np.cos(freqs)], axis=1)       # (S, hd)
    sin_h = np.concatenate([-np.sin(freqs), np.sin(freqs)], axis=1)      # (S, hd)
    cos_t = jnp.asarray(np.tile(cos_h, (1, H)), jnp.float32)             # (S, HD)
    sin_t = jnp.asarray(np.tile(sin_h, (1, H)), jnp.float32)             # (S, HD)

    # Causal additive bias (finite constant: no -inf -> NaN hazard), built once.
    mask = jnp.asarray(np.triu(np.full((S, S), -1e30, dtype=np.float32), k=1))

    return dict(rms1=jnp.asarray(params["rms1"], jnp.float32),
                rms2=jnp.asarray(params["rms2"], jnp.float32),
                wqkv=wqkv, wo=wo, wgu=wgu, wd=wd,
                cos=cos_t, sin=sin_t, mask=mask)


def llama_layer_pallas(x, prep, *, num_heads, head_dim, eps=1e-6,
                       vmem_limit_bytes=48 * 1024 * 1024):
    B, S, D = x.shape
    H, hd = num_heads, head_dim
    HD = H * hd
    F = prep["wgu"].shape[1] // 2

    def const_spec(shape):
        return pl.BlockSpec(shape, lambda b: (0,) * len(shape))

    kernel = functools.partial(llama_layer_kernel,
                               num_heads=H, head_dim=hd, eps=eps)

    return pl.pallas_call(
        kernel,
        out_shape=jax.ShapeDtypeStruct((B, S, D), jnp.float32),
        grid=(B,),
        in_specs=[
            pl.BlockSpec((1, S, D), lambda b: (b, 0, 0)),   # x
            const_spec((1, D)),                             # rms1 weight
            const_spec((1, D)),                             # rms2 weight
            const_spec((D, 3 * HD)),                        # fused wq|wk|wv (bf16, scale folded)
            const_spec((HD, D)),                            # wo (bf16)
            const_spec((D, 2 * F)),                         # fused gate|up (bf16)
            const_spec((F, D)),                             # down_proj (bf16)
            const_spec((S, HD)),                            # cos, halves layout, head-tiled
            const_spec((S, HD)),                            # sin, sign-folded, head-tiled
            const_spec((S, S)),                             # causal additive bias
        ],
        out_specs=pl.BlockSpec((1, S, D), lambda b: (b, 0, 0)),
        compiler_params=pltpu.CompilerParams(
            dimension_semantics=("parallel",),
            # 48 MiB is safe on every generation (v7x has 64 MiB/TC); raise toward
            # ~96-110 MiB on v5e/v6e once weights are tiled/streamed at production sizes.
            vmem_limit_bytes=vmem_limit_bytes),
    )(x, prep["rms1"], prep["rms2"], prep["wqkv"], prep["wo"],
      prep["wgu"], prep["wd"], prep["cos"], prep["sin"], prep["mask"])


# ---------------- pure-JAX f32 reference (mirrors the PyTorch module, eval mode) ----------------
def _rmsnorm_ref(x, w, eps=1e-6):
    var = jnp.mean(x * x, axis=-1, keepdims=True)
    return x * jax.lax.rsqrt(var + eps) * w


def _rope_ref(x, cos, sin):
    # x: (N, S, hd); cos/sin: (S, hd//2); interleaved RoPE as in the PyTorch module.
    xr = x.reshape(*x.shape[:-1], -1, 2)
    x1, x2 = xr[..., 0], xr[..., 1]
    r1 = x1 * cos - x2 * sin
    r2 = x1 * sin + x2 * cos
    return jnp.stack([r1, r2], axis=-1).reshape(x.shape)


def llama_layer_ref(x, p, cos, sin, *, num_heads, head_dim):
    B, S, D = x.shape
    H, hd = num_heads, head_dim
    xn = _rmsnorm_ref(x, p["rms1"][0])
    q = (xn @ p["wq"]).reshape(B, S, H, hd).transpose(0, 2, 1, 3)
    k = (xn @ p["wk"]).reshape(B, S, H, hd).transpose(0, 2, 1, 3)
    v = (xn @ p["wv"]).reshape(B, S, H, hd).transpose(0, 2, 1, 3)
    q = _rope_ref(q.reshape(-1, S, hd), cos, sin).reshape(B, H, S, hd)
    k = _rope_ref(k.reshape(-1, S, hd), cos, sin).reshape(B, H, S, hd)
    scores = jnp.einsum("bhqd,bhkd->bhqk", q, k) / math.sqrt(hd)
    mask = jnp.triu(jnp.ones((S, S), bool), 1)
    scores = jnp.where(mask, -jnp.inf, scores)
    attn = jax.nn.softmax(scores, axis=-1)
    ctx = jnp.einsum("bhqk,bhkd->bhqd", attn, v).transpose(0, 2, 1, 3).reshape(B, S, H * hd)
    x = x + ctx @ p["wo"]
    xn2 = _rmsnorm_ref(x, p["rms2"][0])
    gate = xn2 @ p["wg"]
    up = xn2 @ p["wu"]
    act = gate * (0.5 * up * (1.0 + jax.lax.erf(up / math.sqrt(2.0))))   # exact GELU
    return x + act @ p["wd"]


if __name__ == "__main__":
    # small shapes consistent with the module
    B, S, D = 2, 8, 32
    H = 4
    hd = D // H            # 8
    F = 4 * D              # 128
    HD = H * hd

    key = jax.random.PRNGKey(0)
    keys = jax.random.split(key, 8)
    scale = 0.05
    params = {
        "rms1": jnp.ones((1, D), jnp.float32),
        "rms2": jnp.ones((1, D), jnp.float32),
        "wq": scale * jax.random.normal(keys[0], (D, HD), jnp.float32),
        "wk": scale * jax.random.normal(keys[1], (D, HD), jnp.float32),
        "wv": scale * jax.random.normal(keys[2], (D, HD), jnp.float32),
        "wo": scale * jax.random.normal(keys[3], (HD, D), jnp.float32),
        "wg": scale * jax.random.normal(keys[4], (D, F), jnp.float32),
        "wu": scale * jax.random.normal(keys[5], (D, F), jnp.float32),
        "wd": scale * jax.random.normal(keys[6], (F, D), jnp.float32),
    }
    x = jax.random.normal(keys[7], (B, S, D), jnp.float32)

    # One-time preprocessing (weights / tables / mask), then the fused layer call.
    prep = prepare_llama_layer(params, num_heads=H, head_dim=hd, seq_len=S)
    out = llama_layer_pallas(x, prep, num_heads=H, head_dim=hd)
    out = jax.block_until_ready(out)

    # f32 reference RoPE tables (interleaved form, as in the PyTorch RotaryPositionalEmbedding)
    inv_freq = 1.0 / (10000.0 ** (np.arange(0, hd, 2, dtype=np.float32) / hd))
    freqs = np.outer(np.arange(S, dtype=np.float32), inv_freq)
    cos = jnp.asarray(np.cos(freqs), jnp.float32)
    sin = jnp.asarray(np.sin(freqs), jnp.float32)

    ref = llama_layer_ref(x, params, cos, sin, num_heads=H, head_dim=hd)
    # bf16 MXU operands (f32 accumulation), approx softmax reciprocal and tanh-GELU vs. an
    # all-f32 exact reference -> loosened tolerance.
    np.testing.assert_allclose(np.asarray(out), np.asarray(ref), rtol=2e-2, atol=2e-2)

    print("KERNEL_OK")
</pallas_src>

<mosaic_0001>
module attributes {stable_mosaic.version = 11 : i64} {
  func.func @llama_layer_kernel(%arg0: i32, %arg1: memref<1x8x32xf32, #tpu.memory_space<vmem>>, %arg2: memref<1x32xf32, #tpu.memory_space<vmem>>, %arg3: memref<1x32xf32, #tpu.memory_space<vmem>>, %arg4: memref<32x96xbf16, #tpu.memory_space<vmem>>, %arg5: memref<32x32xbf16, #tpu.memory_space<vmem>>, %arg6: memref<32x256xbf16, #tpu.memory_space<vmem>>, %arg7: memref<128x32xbf16, #tpu.memory_space<vmem>>, %arg8: memref<8x32xf32, #tpu.memory_space<vmem>>, %arg9: memref<8x32xf32, #tpu.memory_space<vmem>>, %arg10: memref<8x8xf32, #tpu.memory_space<vmem>>, %arg11: memref<1x8x32xf32, #tpu.memory_space<vmem>>) attributes {dimension_semantics = [#tpu.dimension_semantics<parallel>], iteration_bounds = array<i64: 2>, scalar_prefetch = 0 : i64, scratch_operands = 0 : i64, tpu.core_type = #tpu.core_type<tc>, window_params = [{transform_indices = @transform_0, window_bounds = array<i64: 1, 8, 32>}, {pipeline_mode = #tpu.pipeline_mode<synchronous>, transform_indices = @transform_1, window_bounds = array<i64: 1, 32>}, {pipeline_mode = #tpu.pipeline_mode<synchronous>, transform_indices = @transform_2, window_bounds = array<i64: 1, 32>}, {pipeline_mode = #tpu.pipeline_mode<synchronous>, transform_indices = @transform_3, window_bounds = array<i64: 32, 96>}, {pipeline_mode = #tpu.pipeline_mode<synchronous>, transform_indices = @transform_4, window_bounds = array<i64: 32, 32>}, {pipeline_mode = #tpu.pipeline_mode<synchronous>, transform_indices = @transform_5, window_bounds = array<i64: 32, 256>}, {pipeline_mode = #tpu.pipeline_mode<synchronous>, transform_indices = @transform_6, window_bounds = array<i64: 128, 32>}, {pipeline_mode = #tpu.pipeline_mode<synchronous>, transform_indices = @transform_7, window_bounds = array<i64: 8, 32>}, {pipeline_mode = #tpu.pipeline_mode<synchronous>, transform_indices = @transform_8, window_bounds = array<i64: 8, 32>}, {pipeline_mode = #tpu.pipeline_mode<synchronous>, transform_indices = @transform_9, window_bounds = array<i64: 8, 8>}, {transform_indices = @transform_10, window_bounds = array<i64: 1, 8, 32>}]} {
    %c0 = arith.constant 0 : index
    %c0_0 = arith.constant 0 : index
    %c0_1 = arith.constant 0 : index
    %0 = vector.load %arg1[%c0, %c0_0, %c0_1] : memref<1x8x32xf32, #tpu.memory_space<vmem>>, vector<1x8x32xf32>
    %1 = vector.shape_cast %0 : vector<1x8x32xf32> to vector<8x32xf32>
    %c0_2 = arith.constant 0 : index
    %c0_3 = arith.constant 0 : index
    %2 = vector.load %arg2[%c0_2, %c0_3] : memref<1x32xf32, #tpu.memory_space<vmem>>, vector<1x32xf32>
    %3 = arith.mulf %1, %1 : vector<8x32xf32>
    %cst = arith.constant dense<0.000000e+00> : vector<8xf32>
    %4 = vector.multi_reduction <add>, %3, %cst [1] : vector<8x32xf32> to vector<8xf32>
    %5 = vector.shape_cast %4 : vector<8xf32> to vector<8x1xf32>
    %cst_4 = arith.constant 3.200000e+01 : f32
    %6 = vector.broadcast %cst_4 : f32 to vector<8x1xf32>
    %7 = arith.divf %5, %6 : vector<8x1xf32>
    %cst_5 = arith.constant 9.99999997E-7 : f32
    %8 = vector.broadcast %cst_5 : f32 to vector<8x1xf32>
    %9 = arith.addf %7, %8 : vector<8x1xf32>
    %10 = math.rsqrt %9 : vector<8x1xf32>
    %11 = vector.broadcast %10 : vector<8x1xf32> to vector<8x32xf32>
    %12 = arith.mulf %1, %11 : vector<8x32xf32>
    %13 = vector.broadcast %2 : vector<1x32xf32> to vector<8x32xf32>
    %14 = arith.mulf %12, %13 : vector<8x32xf32>
    %c0_6 = arith.constant 0 : index
    %c0_7 = arith.constant 0 : index
    %15 = vector.load %arg4[%c0_6, %c0_7] : memref<32x96xbf16, #tpu.memory_space<vmem>>, vector<32x96xbf16>
    %16 = arith.truncf %14 : vector<8x32xf32> to vector<8x32xbf16>
    %cst_8 = arith.constant dense<0.000000e+00> : vector<8x96xf32>
    %17 = tpu.matmul %16, %15, %cst_8 {dimension_numbers = #tpu.dot_dimension_numbers<[1], [0], [0], [1], [0, 0, 1, 1], [], []>} : vector<8x32xbf16>, vector<32x96xbf16>, vector<8x96xf32> -> vector<8x96xf32>
    %18 = vector.extract_strided_slice %17 {offsets = [0, 0], sizes = [8, 32], strides = [1, 1]} : vector<8x96xf32> to vector<8x32xf32>
    %19 = vector.extract_strided_slice %17 {offsets = [0, 32], sizes = [8, 32], strides = [1, 1]} : vector<8x96xf32> to vector<8x32xf32>
    %20 = vector.extract_strided_slice %17 {offsets = [0, 64], sizes = [8, 32], strides = [1, 1]} : vector<8x96xf32> to vector<8x32xf32>
    %c0_9 = arith.constant 0 : index
    %c0_10 = arith.constant 0 : index
    %21 = vector.load %arg8[%c0_9, %c0_10] : memref<8x32xf32, #tpu.memory_space<vmem>>, vector<8x32xf32>
    %c0_11 = arith.constant 0 : index
    %c0_12 = arith.constant 0 : index
    %22 = vector.load %arg9[%c0_11, %c0_12] : memref<8x32xf32, #tpu.memory_space<vmem>>, vector<8x32xf32>
    %23 = arith.mulf %18, %21 : vector<8x32xf32>
    %24 = vector.extract_strided_slice %18 {offsets = [0, 4], sizes = [8, 4], strides = [1, 1]} : vector<8x32xf32> to vector<8x4xf32>
    %25 = vector.extract_strided_slice %18 {offsets = [0, 0], sizes = [8, 4], strides = [1, 1]} : vector<8x32xf32> to vector<8x4xf32>
    %26 = vector.extract_strided_slice %18 {offsets = [0, 12], sizes = [8, 4], strides = [1, 1]} : vector<8x32xf32> to vector<8x4xf32>
    %27 = vector.extract_strided_slice %18 {offsets = [0, 8], sizes = [8, 4], strides = [1, 1]} : vector<8x32xf32> to vector<8x4xf32>
    %28 = vector.extract_strided_slice %18 {offsets = [0, 20], sizes = [8, 4], strides = [1, 1]} : vector<8x32xf32> to vector<8x4xf32>
    %29 = vector.extract_strided_slice %18 {offsets = [0, 16], sizes = [8, 4], strides = [1, 1]} : vector<8x32xf32> to vector<8x4xf32>
    %30 = vector.extract_strided_slice %18 {offsets = [0, 28], sizes = [8, 4], strides = [1, 1]} : vector<8x32xf32> to vector<8x4xf32>
    %31 = vector.extract_strided_slice %18 {offsets = [0, 24], sizes = [8, 4], strides = [1, 1]} : vector<8x32xf32> to vector<8x4xf32>
    %32 = tpu.concatenate %24, %25, %26, %27, %28, %29, %30, %31 in 1 : vector<8x4xf32>, vector<8x4xf32>, vector<8x4xf32>, vector<8x4xf32>, vector<8x4xf32>, vector<8x4xf32>, vector<8x4xf32>, vector<8x4xf32> -> vector<8x32xf32>
    %33 = arith.mulf %32, %22 : vector<8x32xf32>
    %34 = arith.addf %23, %33 : vector<8x32xf32>
    %35 = arith.truncf %34 : vector<8x32xf32> to vector<8x32xbf16>
    %36 = arith.mulf %19, %21 : vector<8x32xf32>
    %37 = vector.extract_strided_slice %19 {offsets = [0, 4], sizes = [8, 4], strides = [1, 1]} : vector<8x32xf32> to vector<8x4xf32>
    %38 = vector.extract_strided_slice %19 {offsets = [0, 0], sizes = [8, 4], strides = [1, 1]} : vector<8x32xf32> to vector<8x4xf32>
    %39 = vector.extract_strided_slice %19 {offsets = [0, 12], sizes = [8, 4], strides = [1, 1]} : vector<8x32xf32> to vector<8x4xf32>
    %40 = vector.extract_strided_slice %19 {offsets = [0, 8], sizes = [8, 4], strides = [1, 1]} : vector<8x32xf32> to vector<8x4xf32>
    %41 = vector.extract_strided_slice %19 {offsets = [0, 20], sizes = [8, 4], strides = [1, 1]} : vector<8x32xf32> to vector<8x4xf32>
    %42 = vector.extract_strided_slice %19 {offsets = [0, 16], sizes = [8, 4], strides = [1, 1]} : vector<8x32xf32> to vector<8x4xf32>
    %43 = vector.extract_strided_slice %19 {offsets = [0, 28], sizes = [8, 4], strides = [1, 1]} : vector<8x32xf32> to vector<8x4xf32>
    %44 = vector.extract_strided_slice %19 {offsets = [0, 24], sizes = [8, 4], strides = [1, 1]} : vector<8x32xf32> to vector<8x4xf32>
    %45 = tpu.concatenate %37, %38, %39, %40, %41, %42, %43, %44 in 1 : vector<8x4xf32>, vector<8x4xf32>, vector<8x4xf32>, vector<8x4xf32>, vector<8x4xf32>, vector<8x4xf32>, vector<8x4xf32>, vector<8x4xf32> -> vector<8x32xf32>
    %46 = arith.mulf %45, %22 : vector<8x32xf32>
    %47 = arith.addf %36, %46 : vector<8x32xf32>
    %48 = arith.truncf %47 : vector<8x32xf32> to vector<8x32xbf16>
    %49 = arith.truncf %20 : vector<8x32xf32> to vector<8x32xbf16>
    %c0_13 = arith.constant 0 : index
    %c0_14 = arith.constant 0 : index
    %50 = vector.load %arg10[%c0_13, %c0_14] : memref<8x8xf32, #tpu.memory_space<vmem>>, vector<8x8xf32>
    %51 = vector.extract_strided_slice %35 {offsets = [0, 0], sizes = [8, 8], strides = [1, 1]} : vector<8x32xbf16> to vector<8x8xbf16>
    %52 = vector.extract_strided_slice %48 {offsets = [0, 0], sizes = [8, 8], strides = [1, 1]} : vector<8x32xbf16> to vector<8x8xbf16>
    %cst_15 = arith.constant dense<0.000000e+00> : vector<8x8xf32>
    %53 = tpu.matmul %51, %52, %cst_15 {dimension_numbers = #tpu.dot_dimension_numbers<[1], [1], [0], [0], [0, 0, 1, 0], [], []>} : vector<8x8xbf16>, vector<8x8xbf16>, vector<8x8xf32> -> vector<8x8xf32>
    %54 = arith.addf %53, %50 : vector<8x8xf32>
    %cst_16 = arith.constant dense<0xFF800000> : vector<8xf32>
    %55 = vector.multi_reduction <maximumf>, %54, %cst_16 [1] : vector<8x8xf32> to vector<8xf32>
    %56 = vector.shape_cast %55 : vector<8xf32> to vector<8x1xf32>
    %57 = vector.broadcast %56 : vector<8x1xf32> to vector<8x8xf32>
    %58 = arith.subf %54, %57 : vector<8x8xf32>
    %59 = math.exp %58 : vector<8x8xf32>
    %cst_17 = arith.constant dense<0.000000e+00> : vector<8xf32>
    %60 = vector.multi_reduction <add>, %59, %cst_17 [1] : vector<8x8xf32> to vector<8xf32>
    %61 = vector.shape_cast %60 : vector<8xf32> to vector<8x1xf32>
    %62 = tpu.reciprocal %61 {approx = true} : vector<8x1xf32> -> vector<8x1xf32>
    %63 = vector.broadcast %62 : vector<8x1xf32> to vector<8x8xf32>
    %64 = arith.mulf %59, %63 : vector<8x8xf32>
    %65 = vector.extract_strided_slice %49 {offsets = [0, 0], sizes = [8, 8], strides = [1, 1]} : vector<8x32xbf16> to vector<8x8xbf16>
    %66 = arith.truncf %64 : vector<8x8xf32> to vector<8x8xbf16>
    %cst_18 = arith.constant dense<0.000000e+00> : vector<8x8xf32>
    %67 = tpu.matmul %66, %65, %cst_18 {dimension_numbers = #tpu.dot_dimension_numbers<[1], [0], [0], [1], [0, 0, 1, 1], [], []>} : vector<8x8xbf16>, vector<8x8xbf16>, vector<8x8xf32> -> vector<8x8xf32>
    %68 = vector.extract_strided_slice %35 {offsets = [0, 8], sizes = [8, 8], strides = [1, 1]} : vector<8x32xbf16> to vector<8x8xbf16>
    %69 = vector.extract_strided_slice %48 {offsets = [0, 8], sizes = [8, 8], strides = [1, 1]} : vector<8x32xbf16> to vector<8x8xbf16>
    %cst_19 = arith.constant dense<0.000000e+00> : vector<8x8xf32>
    %70 = tpu.matmul %68, %69, %cst_19 {dimension_numbers = #tpu.dot_dimension_numbers<[1], [1], [0], [0], [0, 0, 1, 0], [], []>} : vector<8x8xbf16>, vector<8x8xbf16>, vector<8x8xf32> -> vector<8x8xf32>
    %71 = arith.addf %70, %50 : vector<8x8xf32>
    %cst_20 = arith.constant dense<0xFF800000> : vector<8xf32>
    %72 = vector.multi_reduction <maximumf>, %71, %cst_20 [1] : vector<8x8xf32> to vector<8xf32>
    %73 = vector.shape_cast %72 : vector<8xf32> to vector<8x1xf32>
    %74 = vector.broadcast %73 : vector<8x1xf32> to vector<8x8xf32>
    %75 = arith.subf %71, %74 : vector<8x8xf32>
    %76 = math.exp %75 : vector<8x8xf32>
    %cst_21 = arith.constant dense<0.000000e+00> : vector<8xf32>
    %77 = vector.multi_reduction <add>, %76, %cst_21 [1] : vector<8x8xf32> to vector<8xf32>
    %78 = vector.shape_cast %77 : vector<8xf32> to vector<8x1xf32>
    %79 = tpu.reciprocal %78 {approx = true} : vector<8x1xf32> -> vector<8x1xf32>
    %80 = vector.broadcast %79 : vector<8x1xf32> to vector<8x8xf32>
    %81 = arith.mulf %76, %80 : vector<8x8xf32>
    %82 = vector.extract_strided_slice %49 {offsets = [0, 8], sizes = [8, 8], strides = [1, 1]} : vector<8x32xbf16> to vector<8x8xbf16>
    %83 = arith.truncf %81 : vector<8x8xf32> to vector<8x8xbf16>
    %cst_22 = arith.constant dense<0.000000e+00> : vector<8x8xf32>
    %84 = tpu.matmul %83, %82, %cst_22 {dimension_numbers = #tpu.dot_dimension_numbers<[1], [0], [0], [1], [0, 0, 1, 1], [], []>} : vector<8x8xbf16>, vector<8x8xbf16>, vector<8x8xf32> -> vector<8x8xf32>
    %85 = vector.extract_strided_slice %35 {offsets = [0, 16], sizes = [8, 8], strides = [1, 1]} : vector<8x32xbf16> to vector<8x8xbf16>
    %86 = vector.extract_strided_slice %48 {offsets = [0, 16], sizes = [8, 8], strides = [1, 1]} : vector<8x32xbf16> to vector<8x8xbf16>
    %cst_23 = arith.constant dense<0.000000e+00> : vector<8x8xf32>
    %87 = tpu.matmul %85, %86, %cst_23 {dimension_numbers = #tpu.dot_dimension_numbers<[1], [1], [0], [0], [0, 0, 1, 0], [], []>} : vector<8x8xbf16>, vector<8x8xbf16>, vector<8x8xf32> -> vector<8x8xf32>
    %88 = arith.addf %87, %50 : vector<8x8xf32>
    %cst_24 = arith.constant dense<0xFF800000> : vector<8xf32>
    %89 = vector.multi_reduction <maximumf>, %88, %cst_24 [1] : vector<8x8xf32> to vector<8xf32>
    %90 = vector.shape_cast %89 : vector<8xf32> to vector<8x1xf32>
    %91 = vector.broadcast %90 : vector<8x1xf32> to vector<8x8xf32>
    %92 = arith.subf %88, %91 : vector<8x8xf32>
    %93 = math.exp %92 : vector<8x8xf32>
    %cst_25 = arith.constant dense<0.000000e+00> : vector<8xf32>
    %94 = vector.multi_reduction <add>, %93, %cst_25 [1] : vector<8x8xf32> to vector<8xf32>
    %95 = vector.shape_cast %94 : vector<8xf32> to vector<8x1xf32>
    %96 = tpu.reciprocal %95 {approx = true} : vector<8x1xf32> -> vector<8x1xf32>
    %97 = vector.broadcast %96 : vector<8x1xf32> to vector<8x8xf32>
    %98 = arith.mulf %93, %97 : vector<8x8xf32>
    %99 = vector.extract_strided_slice %49 {offsets = [0, 16], sizes = [8, 8], strides = [1, 1]} : vector<8x32xbf16> to vector<8x8xbf16>
    %100 = arith.truncf %98 : vector<8x8xf32> to vector<8x8xbf16>
    %cst_26 = arith.constant dense<0.000000e+00> : vector<8x8xf32>
    %101 = tpu.matmul %100, %99, %cst_26 {dimension_numbers = #tpu.dot_dimension_numbers<[1], [0], [0], [1], [0, 0, 1, 1], [], []>} : vector<8x8xbf16>, vector<8x8xbf16>, vector<8x8xf32> -> vector<8x8xf32>
    %102 = vector.extract_strided_slice %35 {offsets = [0, 24], sizes = [8, 8], strides = [1, 1]} : vector<8x32xbf16> to vector<8x8xbf16>
    %103 = vector.extract_strided_slice %48 {offsets = [0, 24], sizes = [8, 8], strides = [1, 1]} : vector<8x32xbf16> to vector<8x8xbf16>
    %cst_27 = arith.constant dense<0.000000e+00> : vector<8x8xf32>
    %104 = tpu.matmul %102, %103, %cst_27 {dimension_numbers = #tpu.dot_dimension_numbers<[1], [1], [0], [0], [0, 0, 1, 0], [], []>} : vector<8x8xbf16>, vector<8x8xbf16>, vector<8x8xf32> -> vector<8x8xf32>
    %105 = arith.addf %104, %50 : vector<8x8xf32>
    %cst_28 = arith.constant dense<0xFF800000> : vector<8xf32>
    %106 = vector.multi_reduction <maximumf>, %105, %cst_28 [1] : vector<8x8xf32> to vector<8xf32>
    %107 = vector.shape_cast %106 : vector<8xf32> to vector<8x1xf32>
    %108 = vector.broadcast %107 : vector<8x1xf32> to vector<8x8xf32>
    %109 = arith.subf %105, %108 : vector<8x8xf32>
    %110 = math.exp %109 : vector<8x8xf32>
    %cst_29 = arith.constant dense<0.000000e+00> : vector<8xf32>
    %111 = vector.multi_reduction <add>, %110, %cst_29 [1] : vector<8x8xf32> to vector<8xf32>
    %112 = vector.shape_cast %111 : vector<8xf32> to vector<8x1xf32>
    %113 = tpu.reciprocal %112 {approx = true} : vector<8x1xf32> -> vector<8x1xf32>
    %114 = vector.broadcast %113 : vector<8x1xf32> to vector<8x8xf32>
    %115 = arith.mulf %110, %114 : vector<8x8xf32>
    %116 = vector.extract_strided_slice %49 {offsets = [0, 24], sizes = [8, 8], strides = [1, 1]} : vector<8x32xbf16> to vector<8x8xbf16>
    %117 = arith.truncf %115 : vector<8x8xf32> to vector<8x8xbf16>
    %cst_30 = arith.constant dense<0.000000e+00> : vector<8x8xf32>
    %118 = tpu.matmul %117, %116, %cst_30 {dimension_numbers = #tpu.dot_dimension_numbers<[1], [0], [0], [1], [0, 0, 1, 1], [], []>} : vector<8x8xbf16>, vector<8x8xbf16>, vector<8x8xf32> -> vector<8x8xf32>
    %119 = tpu.concatenate %67, %84, %101, %118 in 1 : vector<8x8xf32>, vector<8x8xf32>, vector<8x8xf32>, vector<8x8xf32> -> vector<8x32xf32>
    %c0_31 = arith.constant 0 : index
    %c0_32 = arith.constant 0 : index
    %120 = vector.load %arg5[%c0_31, %c0_32] : memref<32x32xbf16, #tpu.memory_space<vmem>>, vector<32x32xbf16>
    %121 = arith.truncf %119 : vector<8x32xf32> to vector<8x32xbf16>
    %cst_33 = arith.constant dense<0.000000e+00> : vector<8x32xf32>
    %122 = tpu.matmul %121, %120, %cst_33 {dimension_numbers = #tpu.dot_dimension_numbers<[1], [0], [0], [1], [0, 0, 1, 1], [], []>} : vector<8x32xbf16>, vector<32x32xbf16>, vector<8x32xf32> -> vector<8x32xf32>
    %123 = arith.addf %1, %122 : vector<8x32xf32>
    %c0_34 = arith.constant 0 : index
    %c0_35 = arith.constant 0 : index
    %124 = vector.load %arg3[%c0_34, %c0_35] : memref<1x32xf32, #tpu.memory_space<vmem>>, vector<1x32xf32>
    %125 = arith.mulf %123, %123 : vector<8x32xf32>
    %cst_36 = arith.constant dense<0.000000e+00> : vector<8xf32>
    %126 = vector.multi_reduction <add>, %125, %cst_36 [1] : vector<8x32xf32> to vector<8xf32>
    %127 = vector.shape_cast %126 : vector<8xf32> to vector<8x1xf32>
    %cst_37 = arith.constant 3.200000e+01 : f32
    %128 = vector.broadcast %cst_37 : f32 to vector<8x1xf32>
    %129 = arith.divf %127, %128 : vector<8x1xf32>
    %cst_38 = arith.constant 9.99999997E-7 : f32
    %130 = vector.broadcast %cst_38 : f32 to vector<8x1xf32>
    %131 = arith.addf %129, %130 : vector<8x1xf32>
    %132 = math.rsqrt %131 : vector<8x1xf32>
    %133 = vector.broadcast %132 : vector<8x1xf32> to vector<8x32xf32>
    %134 = arith.mulf %123, %133 : vector<8x32xf32>
    %135 = vector.broadcast %124 : vector<1x32xf32> to vector<8x32xf32>
    %136 = arith.mulf %134, %135 : vector<8x32xf32>
    %c0_39 = arith.constant 0 : index
    %c0_40 = arith.constant 0 : index
    %137 = vector.load %arg6[%c0_39, %c0_40] : memref<32x256xbf16, #tpu.memory_space<vmem>>, vector<32x256xbf16>
    %138 = arith.truncf %136 : vector<8x32xf32> to vector<8x32xbf16>
    %cst_41 = arith.constant dense<0.000000e+00> : vector<8x256xf32>
    %139 = tpu.matmul %138, %137, %cst_41 {dimension_numbers = #tpu.dot_dimension_numbers<[1], [0], [0], [1], [0, 0, 1, 1], [], []>} : vector<8x32xbf16>, vector<32x256xbf16>, vector<8x256xf32> -> vector<8x256xf32>
    %140 = vector.extract_strided_slice %139 {offsets = [0, 0], sizes = [8, 128], strides = [1, 1]} : vector<8x256xf32> to vector<8x128xf32>
    %141 = vector.extract_strided_slice %139 {offsets = [0, 128], sizes = [8, 128], strides = [1, 1]} : vector<8x256xf32> to vector<8x128xf32>
    %142 = arith.mulf %141, %141 : vector<8x128xf32>
    %143 = arith.mulf %141, %142 : vector<8x128xf32>
    %cst_42 = arith.constant 4.471500e-02 : f32
    %144 = vector.broadcast %cst_42 : f32 to vector<8x128xf32>
    %145 = arith.mulf %144, %143 : vector<8x128xf32>
    %146 = arith.addf %141, %145 : vector<8x128xf32>
    %cst_43 = arith.constant 0.797884583 : f32
    %147 = vector.broadcast %cst_43 : f32 to vector<8x128xf32>
    %148 = arith.mulf %147, %146 : vector<8x128xf32>
    %149 = math.tanh %148 : vector<8x128xf32>
    %cst_44 = arith.constant 1.000000e+00 : f32
    %150 = vector.broadcast %cst_44 : f32 to vector<8x128xf32>
    %151 = arith.addf %150, %149 : vector<8x128xf32>
    %cst_45 = arith.constant 5.000000e-01 : f32
    %152 = vector.broadcast %cst_45 : f32 to vector<8x128xf32>
    %153 = arith.mulf %152, %151 : vector<8x128xf32>
    %154 = arith.mulf %141, %153 : vector<8x128xf32>
    %155 = arith.mulf %140, %154 : vector<8x128xf32>
    %c0_46 = arith.constant 0 : index
    %c0_47 = arith.constant 0 : index
    %156 = vector.load %arg7[%c0_46, %c0_47] : memref<128x32xbf16, #tpu.memory_space<vmem>>, vector<128x32xbf16>
    %157 = arith.truncf %155 : vector<8x128xf32> to vector<8x128xbf16>
    %cst_48 = arith.constant dense<0.000000e+00> : vector<8x32xf32>
    %158 = tpu.matmul %157, %156, %cst_48 {dimension_numbers = #tpu.dot_dimension_numbers<[1], [0], [0], [1], [0, 0, 1, 1], [], []>} : vector<8x128xbf16>, vector<128x32xbf16>, vector<8x32xf32> -> vector<8x32xf32>
    %159 = arith.addf %123, %158 : vector<8x32xf32>
    %c0_49 = arith.constant 0 : index
    %c0_50 = arith.constant 0 : index
    %c0_51 = arith.constant 0 : index
    %160 = vector.load %arg11[%c0_49, %c0_50, %c0_51] : memref<1x8x32xf32, #tpu.memory_space<vmem>>, vector<1x8x32xf32>
    %161 = vector.shape_cast %160 : vector<1x8x32xf32> to vector<8x32xf32>
    %162 = vector.shape_cast %159 : vector<8x32xf32> to vector<1x8x32xf32>
    tpu.vector_store %arg11[%c0_49, %c0_50, %c0_51], %162 {strides = array<i32>} : memref<1x8x32xf32, #tpu.memory_space<vmem>>, vector<1x8x32xf32>,
    return
  }
  func.func @transform_0(%arg0: i32) -> (i32, i32, i32) {
    %c0_i32 = arith.constant 0 : i32
    %c0_i32_0 = arith.constant 0 : i32
    %c0_i32_1 = arith.constant 0 : i32
    return %arg0, %c0_i32, %c0_i32_0 : i32, i32, i32
  }
  func.func @transform_1(%arg0: i32) -> (i32, i32) {
    %c0_i32 = arith.constant 0 : i32
    %c0_i32_0 = arith.constant 0 : i32
    %c0_i32_1 = arith.constant 0 : i32
    return %c0_i32, %c0_i32_0 : i32, i32
  }
  func.func @transform_2(%arg0: i32) -> (i32, i32) {
    %c0_i32 = arith.constant 0 : i32
    %c0_i32_0 = arith.constant 0 : i32
    %c0_i32_1 = arith.constant 0 : i32
    return %c0_i32, %c0_i32_0 : i32, i32
  }
  func.func @transform_3(%arg0: i32) -> (i32, i32) {
    %c0_i32 = arith.constant 0 : i32
    %c0_i32_0 = arith.constant 0 : i32
    %c0_i32_1 = arith.constant 0 : i32
    return %c0_i32, %c0_i32_0 : i32, i32
  }
  func.func @transform_4(%arg0: i32) -> (i32, i32) {
    %c0_i32 = arith.constant 0 : i32
    %c0_i32_0 = arith.constant 0 : i32
    %c0_i32_1 = arith.constant 0 : i32
    return %c0_i32, %c0_i32_0 : i32, i32
  }
  func.func @transform_5(%arg0: i32) -> (i32, i32) {
    %c0_i32 = arith.constant 0 : i32
    %c0_i32_0 = arith.constant 0 : i32
    %c0_i32_1 = arith.constant 0 : i32
    return %c0_i32, %c0_i32_0 : i32, i32
  }
  func.func @transform_6(%arg0: i32) -> (i32, i32) {
    %c0_i32 = arith.constant 0 : i32
    %c0_i32_0 = arith.constant 0 : i32
    %c0_i32_1 = arith.constant 0 : i32
    return %c0_i32, %c0_i32_0 : i32, i32
  }
  func.func @transform_7(%arg0: i32) -> (i32, i32) {
    %c0_i32 = arith.constant 0 : i32
    %c0_i32_0 = arith.constant 0 : i32
    %c0_i32_1 = arith.constant 0 : i32
    return %c0_i32, %c0_i32_0 : i32, i32
  }
  func.func @transform_8(%arg0: i32) -> (i32, i32) {
    %c0_i32 = arith.constant 0 : i32
    %c0_i32_0 = arith.constant 0 : i32
    %c0_i32_1 = arith.constant 0 : i32
    return %c0_i32, %c0_i32_0 : i32, i32
  }
  func.func @transform_9(%arg0: i32) -> (i32, i32) {
    %c0_i32 = arith.constant 0 : i32
    %c0_i32_0 = arith.constant 0 : i32
    %c0_i32_1 = arith.constant 0 : i32
    return %c0_i32, %c0_i32_0 : i32, i32
  }
  func.func @transform_10(%arg0: i32) -> (i32, i32, i32) {
    %c0_i32 = arith.constant 0 : i32
    %c0_i32_0 = arith.constant 0 : i32
    %c0_i32_1 = arith.constant 0 : i32
    return %arg0, %c0_i32, %c0_i32_0 : i32, i32, i32
  }
}

</mosaic_0001>

<bundles_post_ra>
// kernel: tpu_custom_call.1
= control target key start
LH: loop header
LB: loop body
LE: loop exit
PB: predicated region body
PF: predicated region fallthrough
CT: control target
= control target key end

     0   :  { %15 = vsyncpa [#allocation3], 0  ;;  %s2056_s0 = inlined_call_operand.vmem [shape: f32[2,8,32], index: 0, kind: input, shape index: {}]   ;;  %s2057_s1 = inlined_call_operand.vmem [shape: f32[1,32], index: 1, kind: input, shape index: {}]   ;;  %s2058_s2 = inlined_call_operand.vmem [shape: f32[1,32], index: 2, kind: input, shape index: {}]   ;;  %s2059_s3 = inlined_call_operand.vmem [shape: bf16[32,96], index: 3, kind: input, shape index: {}]   ;;  %s2060_s4 = inlined_call_operand.vmem [shape: bf16[32,32], index: 4, kind: input, shape index: {}]   ;;  %s2061_s5 = inlined_call_operand.vmem [shape: bf16[32,256], index: 5, kind: input, shape index: {}]   ;;  %s2062_s6 = inlined_call_operand.vmem [shape: bf16[128,32], index: 6, kind: input, shape index: {}]   ;;  %s2063_s7 = inlined_call_operand.vmem [shape: f32[8,32], index: 7, kind: input, shape index: {}]   ;;  %s2064_s8 = inlined_call_operand.hbm [shape: f32[8,32], index: 8, kind: input, shape index: {}]   ;;  %s2065_s9 = inlined_call_operand.vmem [shape: f32[8,8], index: 9, kind: input, shape index: {}]   ;;  %s2066_s10 = inlined_call_operand.hbm [shape: f32[2,8,32], index: 10, kind: output, shape index: {}]  }
   0x1   :  { %16 = vsyncpa [#allocation4], 0 }
   0x2   :  { %18 = vsyncpa [#allocation4 + $0x1], 0  ;;  %s1750_s13 = smov 0   ;;  %s1752_s14 = smov 0  }
   0x3   :  { %s1754_s15 = smov 0   ;;  %s1756_s16 = smov 0  }
   0x4 LB: > { %s1771_s17 = sadd.s32 4294967295, %s1669_s16   ;;  %s1307_s18 = sadd.s32 4294967294, %s1669_s16   ;;  %s1669_s16 = sphi %s1756_s16, %s2082_s16   ;;  %s1665_s15 = sphi %s1754_s15, %s2081_s15   ;;  %s1661_s14 = sphi %s1752_s14, %s2080_s14   ;;  %s1657_s13 = sphi %s1750_s13, %s2079_s13  }
   0x5   : > { %s1775_s19 = sadd.s32 1, %s1669_s16   ;;  %s246_s20 = sadd.s32 1, %s1665_s15 }
   0x6   : > { %s243_s21 = ssub.s32 %s1669_s16, %s1775_s19  ;;  %p256_p0 = scmp.ne.s32.totalorder %s1665_s15, %s1661_s14 }
   0x7   : > { %p244_p1 = scmp.eq.s32.totalorder %s243_s21, 0  ;;  %p257_p2 = scmp.eq.s32.totalorder %s1771_s17, 1 }
   0x8   : > { %p262_p3 = scmp.ne.s32.totalorder %s1661_s14, %s1657_s13  ;;  %p263_p4 = scmp.eq.s32.totalorder %s1307_s18, 1 }
   0x9   : > { %s1786_s22 = scalar_select %p244_p1, %s1665_s15, %s246_s20  }
   0xa   : > { %p1788_p5 = por %p257_p2, %p256_p0  ;;  %p1792_p6 = por %p263_p4, %p262_p3 }
   0xb   : > { %p1308_p7 = scmp.ge.s32.totalorder %s1669_s16, 1  ;;  %p270_p8 = scmp.lt.s32.totalorder %s1669_s16, 3 }
   0xc   : > { %s2070_s23 = scalar_select %p1788_p5, 1, 0 }
   0xd   : > { %s2071_s24 = scalar_select %p1792_p6, 1, 0 }
   0xe   : > { %p2067_p9 = scmp.eq.s32.totalorder %s1771_s17, 0  ;;  %p1799_p10 = pnand %p1308_p7, %p270_p8 }
   0xf   : > { %s1671_s26 = smov [#allocation2]   ;;  %s1575_s11 = scalar_lea.hbm %s2064_s8, 128 }
  0x10   : > { %s2072_s25 = scalar_select %p1799_p10, 1, 0 }
  0x11   : > { %s304_s27 = sshll.u32 %s1671_s26, 4  ;;  %p1469_p11 = pneg %p1799_p10  ;;  %s305_s27 = int_to_ptr.vmem [resolvable:$true] %s304_s27 }
  0x12   : > { %p1576_p13 = scmp.ne.s32.totalorder %s2064_s8, %s1575_s11  ;;  %p1582_p3 = scmp.lt.u32.totalorder %s1575_s11, %s2064_s8 }
  0x13   : > { %p1807_p12 = pnand %p2067_p9, %p1469_p11 }
  0x15   : > { %p1577_p0 = pneg %p1807_p12 }
  0x17   : > { %p1578_p1 = pnand %p1577_p0, %p1576_p13 }
  0x19   : > { %p1579_p2 = pneg %p1578_p1 }
  0x1b   : > { %p1584_p4 = pnand %p1582_p3, %p1579_p2 }
  0x1d   : > { %1587 = shalt.err (!%p1584_p4)
}
  0x1e   : > { %s1588_s26 = scalar_lea.vmem %s305_s27, 128  ;;  %p1596_p9 = scmp.lt.s32.totalorder %s305_s27, %s305_s27 }
  0x1f   : > { %p1589_p7 = scmp.ne.s32.totalorder %s305_s27, %s1588_s26  ;;  %p1597_p6 = scmp.lt.s32.totalorder %s1588_s26, %s1588_s26 }
  0x21   : > { %p1591_p8 = pnand %p1589_p7, %p1577_p0  ;;  %p1598_p5 = por %p1597_p6, %p1596_p9 }
  0x23   : > { %p1592_p11 = pneg %p1591_p8 }
  0x25   : > { %p1599_p10 = pnand %p1598_p5, %p1592_p11 }
  0x27   : > { %1602 = shalt.err (!%p1599_p10)
}
  0x28   : > { %1472 = dma.hbm_to_vmem [thread:$0]  (!%p1807_p12), %s2064_s8, 128, %s305_s27, [#allocation3]  }
  0x29   : > { %p2074_p13 = scmp.ne.s32.totalorder %s2072_s25, 0 }
  0x2a   : > { %p2075_p1 = scmp.eq.s32.totalorder (!%p2074_p13), %s1771_s17, 0 }
  0x2b   : > { %327 = sbr.rel (%p2074_p13) target bundleno = 2577 (0xa11), region = 60 }
  0x32   : > { %1648 = dma.done.wait (%p2075_p1), [#allocation3], 128   ;;  %p2076_p0 = pmov %p2075_p1 }
  0x33   : > { %p364_p6 = scmp.lt.s32.totalorder %s1771_s17, 1  ;;  %vm372_vm0 = vcmask 261120   ;;  %v1535_v3 = vld [vmem:[%s2059_s3] sm:$0xff]   ;;  %v1672_v4 = vmov 0.0   ;;  %vm1673_vm1 = vmmov 0   ;;  %v1536_v5 = vld [vmem:[%s2059_s3 + $0x8] sm:$0xff]  }
  0x34   : > { %1650 = vsyncadd (%p2076_p0), [#allocation3], 4294967168  ;;  %1379 = vmatprep.subr.bf16.mxu0 %v1672_v4  ;;  %1383 = vmatprep.mubr.msk.bf16.mxu0 %vm1673_vm1, %v1672_v4  ;;  %v1315_v10 = vld [vmem:[%s2057_s1] ss:$0 sm:$0xff]  ;;  %s1674_s18 = smov 100   ;;  %s1675_s28 = smov 92  }
  0x35   : > { %s365_s11 = scalar_select %p364_p6, %s1771_s17, 1  ;;  %1380 = vmatpush3.bf16.msra.mxu0 %v1535_v3  ;;  %1399 = vmatprep.subr.bf16.mxu1 %v1672_v4  ;;  %v448_v14 = vld [vmem:[%s2063_s7] sm:$0xff]  ;;  %vm458_vm2 = vcmask 31744   ;;  %vm460_vm3 = vcmask 64512   ;;  %vm462_vm4 = vcmask 97280   ;;  %vm464_vm5 = vcmask 130048  }
  0x36   : > { %1381 = vmatprep.subr.bf16.mxu0 %v1672_v4  ;;  %1401 = vmatprep.mubr.msk.bf16.mxu1 %vm1673_vm1, %v1672_v4  ;;  %vm466_vm6 = vcmask 162816   ;;  %vm468_vm7 = vcmask 195584   ;;  %vm470_vm8 = vcmask 228352   ;;  %v449_v27 = vld [vmem:[#allocation2] sm:$0xff]  ;;  %s1677_s25 = smov 124   ;;  %s1678_s27 = smov 4  }
  0x37   : > { %s1314_s12 = sshll.u32 %s365_s11, 3  ;;  %s1679_s21 = smov 96   ;;  %v501_v59 = vld [vmem:[%s2065_s9] sm:$0xff]  ;;  %vm569_vm9 = vcmask 1043456  }
  0x38   : > { %s367_s20 = scalar_lea.vmem %s2056_s0, %s1314_s12  ;;  %s1680_s26 = smov 88  }
  0x39   : > { %v1838_v0 = vld [vmem:[%s367_s20] sm:$0xff]  ;;  %1382 = vmatpush3.bf16.msra.mxu0 %v1536_v5  ;;  %s1676_s20 = smov 32   ;;  %s1681_s29 = smov 80  }
  0x3a   : > { %v371_v1 = vmul.f32 %v1838_v0, %v1838_v0  ;;  %1387 = vmatprep.subr.bf16.mxu0 %v1672_v4  ;;  %s1682_s30 = smov 72   ;;  %s1683_s11 = smov 120  }
  0x3b   : > { %s1684_s12 = smov 112   ;;  %p2077_p9 = scmp.ne.s32.totalorder %s2070_s23, 0 }
  0x3c   : > { %v373_v2 = vsel %vm372_vm0, %v371_v1, 0.0 }
  0x3d   : > { %374 = vadd.xlane.f32.xlu0 %v373_v2 }
  0xca   : > { %v375_v6 = vpop.xlane.xlu0 %374 }
  0xcb   : > { %v377_v7 = vmul.f32 0.03125, %v375_v6 }
  0xcd   : > { %v378_v8 = vadd.f32 1e-06, %v377_v7 }
  0xcf   : > { %1553 = vrsqrt.f32 %v378_v8 }
  0xd9   : > { %v1554_v9 = vpop.eup %1553 }
  0xda   : > { %v380_v11 = vmul.f32 %v1554_v9, %v1838_v0 }
  0xdc   : > { %v387_v12 = vmul.f32 %v1315_v10, %v380_v11 }
  0xde   : > { %v392_v13 = vpack.c.bf16 %v387_v12, %v387_v12 }
  0xe0   : > { %1384 = vmatmul.mubr.msk.bf16.vlgmr.msra.gmra.mrb[0].mxu0 %vm372_vm0, %v392_v13 }
  0xe1   : > { %1389 = vmatprep.mubr.msk.bf16.mxu0 %vm1673_vm1, %v1672_v4 }
 0x1b3   : > { %v1867_v15 = vpop.f32.mrb[0].mxu0 }
 0x1b4   : > { %483 = vrot.lane.b32.xlu1 %v1867_v15, %s1674_s18  ;;  %480 = vrot.lane.b32.xlu0 %v1867_v15, %s1675_s28  ;;  %v1385_v16 = vpop.f32.mrb[1].mxu0  ;;  %v450_v17 = vmul.f32 %v448_v14, %v1867_v15  ;;  %s1685_s18 = smov 104   ;;  %s1691_s28 = smov 16  }
 0x1b5   : > { %v445_v18 = vpop.f32.mrb[2].mxu0 }
 0x1b6   : > { %v1386_v19 = vpop.f32.mrb[3].mxu0 }
 0x1b8   : > { %476 = vrot.lane.b32.xlu1 %v448_v14, %s1676_s20 }
 0x226   : > { %v484_v20 = vpop.permute.xlu1 %483  ;;  %v481_v21 = vpop.permute.xlu0 %480 }
 0x227   : > { %v486_v22 = vsel %vm458_vm2, %v481_v21, %v484_v20 }
 0x228   : > { %v487_v23 = vsel %vm460_vm3, %v486_v22, %v481_v21 }
 0x229   : > { %v488_v24 = vsel %vm462_vm4, %v487_v23, %v484_v20 }
 0x22a   : > { %v489_v25 = vsel %vm464_vm5, %v488_v24, %v481_v21  ;;  %v477_v31 = vpop.permute.xlu1 %476 }
 0x22b   : > { %v490_v26 = vsel %vm466_vm6, %v489_v25, %v484_v20  ;;  %v479_v32 = vmul.f32 %v477_v31, %v1867_v15 }
 0x22c   : > { %v491_v28 = vsel %vm468_vm7, %v490_v26, %v481_v21 }
 0x22d   : > { %v492_v29 = vsel %vm470_vm8, %v491_v28, %v484_v20 }
 0x22e   : > { %v493_v30 = vmul.f32 %v492_v29, %v449_v27 }
 0x230   : > { %495 = vrot.lane.b32.xlu1 %v493_v30, %s1676_s20  ;;  %s1692_s20 = smov 24  }
 0x234   : > { %452 = vrot.lane.b32.xlu1 %v1867_v15, %s1677_s25  ;;  %s1686_s25 = smov 56  }
 0x238   : > { %455 = vrot.lane.b32.xlu1 %v1867_v15, %s1678_s27  ;;  %s1687_s27 = smov 64  }
 0x2a2   : > { %v496_v33 = vpop.permute.xlu1 %495 }
 0x2a3   : > { %v498_v34 = vadd.f32 %v496_v33, %v479_v32 }
 0x2a5   : > { %v499_v35 = vpack.c.bf16 %v498_v34, %v498_v34 }
 0x2a6   : > { %v453_v36 = vpop.permute.xlu1 %452 }
 0x2a7   : > { %503 = vrot.lane.b32.xlu1 %v499_v35, %s1679_s21  ;;  %s1688_s21 = smov 40  }
 0x2aa   : > { %v456_v37 = vpop.permute.xlu1 %455 }
 0x2ab   : > { %v459_v38 = vsel %vm458_vm2, %v453_v36, %v456_v37  ;;  %616 = vrot.lane.b32.xlu1 %v499_v35, %s1680_s26  ;;  %s1689_s26 = smov 48  }
 0x2ac   : > { %v461_v39 = vsel %vm460_vm3, %v459_v38, %v453_v36  ;;  %v500_v38 = vpack.c.bf16 %v1867_v15, %v1867_v15 }
 0x2ad   : > { %v463_v40 = vsel %vm462_vm4, %v461_v39, %v456_v37 }
 0x2ae   : > { %v465_v41 = vsel %vm464_vm5, %v463_v40, %v453_v36 }
 0x2af   : > { %v467_v42 = vsel %vm466_vm6, %v465_v41, %v456_v37  ;;  %726 = vrot.lane.b32.xlu1 %v499_v35, %s1681_s29  ;;  %s1690_s29 = smov 8  }
 0x2b0   : > { %v469_v43 = vsel %vm468_vm7, %v467_v42, %v453_v36 }
 0x2b1   : > { %v471_v44 = vsel %vm470_vm8, %v469_v43, %v456_v37 }
 0x2b2   : > { %v472_v45 = vmul.f32 %v471_v44, %v449_v27 }
 0x2b3   : > { %836 = vrot.lane.b32.xlu1 %v499_v35, %s1682_s30 }
 0x2b4   : > { %v473_v46 = vadd.f32 %v472_v45, %v450_v17 }
 0x2b6   : > { %v474_v47 = vpack.c.bf16 %v473_v46, %v473_v46 }
 0x2b8   : > { %614 = vrot.lane.b32.xlu0 %v474_v47, %s1683_s11  ;;  %s1345_s11 = sshll.u32 %s1771_s17, 7 }
 0x2bc   : > { %724 = vrot.lane.b32.xlu0 %v474_v47, %s1684_s12 }
 0x2c0   : > { %834 = vrot.lane.b32.xlu0 %v474_v47, %s1685_s18 }
 0x319   : > { %v504_v48 = vpop.permute.xlu1 %503 }
 0x31a   : > { %v509_v49 = vsel %vm460_vm3, %v504_v48, 0 }
 0x31b   : > { %1388 = vmatpush3.bf16.xpose.msra.mxu0 %v509_v49 }
 0x31c   : > { %1393 = vmatprep.subr.bf16.mxu0 %v1672_v4 }
 0x31d   : > { %v617_v50 = vpop.permute.xlu1 %616 }
 0x31e   : > { %v622_v51 = vsel %vm460_vm3, %v617_v50, 0 }
 0x31f   : > { %1400 = vmatpush3.bf16.xpose.msra.mxu1 %v622_v51 }
 0x320   : > { %1411 = vmatprep.subr.bf16.mxu1 %v1672_v4 }
 0x321   : > { %v727_v52 = vpop.permute.xlu1 %726 }
 0x322   : > { %1390 = vmatmul.mubr.msk.bf16.vlgmr.msra.gmra.mrb[4].mxu0 %vm460_vm3, %v474_v47  ;;  %v732_v54 = vsel %vm460_vm3, %v727_v52, 0 }
 0x323   : > { %1395 = vmatprep.mubr.msk.bf16.mxu0 %vm1673_vm1, %v1672_v4 }
 0x325   : > { %v837_v55 = vpop.permute.xlu1 %836 }
 0x326   : > { %v842_v57 = vsel %vm460_vm3, %v837_v55, 0 }
 0x32a   : > { %v615_v53 = vpop.permute.xlu0 %614 }
 0x32b   : > { %1402 = vmatmul.mubr.msk.bf16.vlgmr.msra.gmra.mrb[0].mxu1 %vm460_vm3, %v615_v53 }
 0x32c   : > { %1412 = vmatpush3.bf16.xpose.msra.mxu1 %v732_v54  ;;  %1413 = vmatprep.mubr.msk.bf16.mxu1 %vm1673_vm1, %v1672_v4 }
 0x32d   : > { %1423 = vmatprep.subr.bf16.mxu1 %v1672_v4 }
 0x32e   : > { %v725_v56 = vpop.permute.xlu0 %724 }
 0x332   : > { %v835_v58 = vpop.permute.xlu0 %834 }
 0x333   : > { %1414 = vmatmul.mubr.msk.bf16.vlgmr.msra.gmra.mrb[4].mxu1 %vm460_vm3, %v725_v56 }
 0x334   : > { %1424 = vmatpush3.bf16.xpose.msra.mxu1 %v842_v57  ;;  %1425 = vmatprep.mubr.msk.bf16.mxu1 %vm1673_vm1, %v1672_v4 }
 0x335   : > { %1435 = vmatprep.subr.bf16.mxu1 %v1672_v4 }
 0x33b   : > { %1426 = vmatmul.mubr.msk.bf16.vlgmr.msra.gmra.mrb[8].mxu1 %vm460_vm3, %v835_v58 }
 0x33c   : > { %1439 = vmatprep.mubr.msk.bf16.mxu1 %vm1673_vm1, %v1672_v4 }
 0x3f5   : > { %v545_v60 = vpop.f32.mrb[4].mxu0 }
 0x3f6   : > { %v546_v61 = vadd.f32 %v545_v60, %v501_v59  ;;  %v1391_v62 = vpop.f32.mrb[5].mxu0 }
 0x3f7   : > { %v548_v63 = vpop.f32.mrb[6].mxu0 }
 0x3f8   : > { %v1392_v1 = vpop.f32.mrb[7].mxu0  ;;  %v551_v2 = vsel %vm460_vm3, %v546_v61, -inf }
 0x3f9   : > { %552 = vmax.xlane.f32.xlu1 %v551_v2 }
 0x3fe   : > { %v658_v3 = vpop.f32.mrb[0].mxu1 }
 0x3ff   : > { %v659_v5 = vadd.f32 %v658_v3, %v501_v59  ;;  %v1403_v6 = vpop.f32.mrb[1].mxu1 }
 0x400   : > { %v661_v7 = vpop.f32.mrb[2].mxu1 }
 0x401   : > { %v1404_v8 = vpop.f32.mrb[3].mxu1  ;;  %v664_v9 = vsel %vm460_vm3, %v659_v5, -inf }
 0x402   : > { %665 = vmax.xlane.f32.xlu0 %v664_v9 }
 0x406   : > { %v768_v10 = vpop.f32.mrb[4].mxu1 }
 0x407   : > { %v769_v11 = vadd.f32 %v768_v10, %v501_v59  ;;  %v1415_v12 = vpop.f32.mrb[5].mxu1 }
 0x408   : > { %v771_v13 = vpop.f32.mrb[6].mxu1 }
 0x409   : > { %v1416_v14 = vpop.f32.mrb[7].mxu1  ;;  %v774_v16 = vsel %vm460_vm3, %v769_v11, -inf  ;;  %v1537_v13 = vld [vmem:[%s2060_s4] sm:$0xff]  }
 0x40a   : > { %775 = vmax.xlane.f32.xlu0 %v774_v16  ;;  %1436 = vmatpush3.bf16.msra.mxu1 %v1537_v13  ;;  %v1538_v14 = vld [vmem:[%s2060_s4 + $0x8] sm:$0xff]  }
 0x40b   : > { %1437 = vmatprep.subr.bf16.mxu1 %v1672_v4 }
 0x40e   : > { %v878_v17 = vpop.f32.mrb[8].mxu1  ;;  %1438 = vmatpush3.bf16.msra.mxu1 %v1538_v14 }
 0x40f   : > { %v879_v18 = vadd.f32 %v878_v17, %v501_v59  ;;  %v1427_v19 = vpop.f32.mrb[9].mxu1  ;;  %1443 = vmatprep.subr.bf16.mxu1 %v1672_v4 }
 0x410   : > { %v881_v20 = vpop.f32.mrb[10].mxu1 }
 0x411   : > { %v1428_v21 = vpop.f32.mrb[11].mxu1  ;;  %v884_v22 = vsel %vm460_vm3, %v879_v18, -inf }
 0x412   : > { %885 = vmax.xlane.f32.xlu1 %v884_v22 }
 0x486   : > { %v553_v23 = vpop.xlane.xlu1 %552 }
 0x487   : > { %v554_v24 = vsub.f32 %v546_v61, %v553_v23 }
 0x489   : > { %v555_v25 = vmul.f32 1.442695, %v554_v24 }
 0x48b   : > { %1555 = vpow2.f32 %v555_v25 }
 0x48f   : > { %v666_v26 = vpop.xlane.xlu0 %665 }
 0x490   : > { %v667_v27 = vsub.f32 %v659_v5, %v666_v26 }
 0x492   : > { %v668_v28 = vmul.f32 1.442695, %v667_v27 }
 0x494   : > { %1557 = vpow2.f32 %v668_v28 }
 0x495   : > { %v1556_v29 = vpop.eup %1555 }
 0x496   : > { %v557_v30 = vsel %vm460_vm3, %v1556_v29, 0.0 }
 0x497   : > { %v776_v31 = vpop.xlane.xlu0 %775  ;;  %558 = vadd.xlane.f32.xlu0 %v557_v30 }
 0x498   : > { %v777_v32 = vsub.f32 %v769_v11, %v776_v31 }
 0x49a   : > { %v778_v33 = vmul.f32 1.442695, %v777_v32 }
 0x49c   : > { %1559 = vpow2.f32 %v778_v33 }
 0x49e   : > { %v1558_v34 = vpop.eup %1557 }
 0x49f   : > { %v670_v35 = vsel %vm460_vm3, %v1558_v34, 0.0  ;;  %v886_v39 = vpop.xlane.xlu1 %885 }
 0x4a0   : > { %671 = vadd.xlane.f32.xlu1 %v670_v35  ;;  %v887_v40 = vsub.f32 %v879_v18, %v886_v39  ;;  %v1539_v39 = vld [vmem:[%s2061_s5] ss:$8 sps:$4 sm:$0xff]  }
 0x4a2   : > { %v888_v41 = vmul.f32 1.442695, %v887_v40  ;;  %v1544_v40 = vld [vmem:[%s2061_s5 + $0x14] ss:$8 sps:$4 sm:$0xff]  }
 0x4a4   : > { %1561 = vpow2.f32 %v888_v41  ;;  %v1693_v41 = vmov 0  }
 0x4a6   : > { %v1560_v36 = vpop.eup %1559 }
 0x4a7   : > { %v780_v37 = vsel %vm460_vm3, %v1560_v36, 0.0 }
 0x4a8   : > { %781 = vadd.xlane.f32.xlu0 %v780_v37 }
 0x4ae   : > { %v1562_v42 = vpop.eup %1561 }
 0x4af   : > { %v890_v43 = vsel %vm460_vm3, %v1562_v42, 0.0 }
 0x4b1   : > { %676 = vrot.lane.b32.xlu1 %v500_v38, %s1686_s25  ;;  %s2013_s25 = scalar_lea.hbm %s2066_s10, %s1345_s11 }
 0x4be   : > { %564 = vrot.lane.b32.xlu0 %v500_v38, %s1687_s27 }
 0x4c2   : > { %896 = vrot.lane.b32.xlu0 %v500_v38, %s1688_s21  ;;  %s1694_s21 = smov [#allocation5]  }
 0x4d5   : > { %891 = vadd.xlane.f32.xlu1 %v890_v43 }
 0x4e6   : > { %786 = vrot.lane.b32.xlu1 %v500_v38, %s1689_s26  ;;  %v1541_v38 = vld [vmem:[%s2061_s5 + $0x4] ss:$8 sps:$4 sm:$0xff]   ;;  %s1607_s26 = sshll.u32 %s1694_s21, 4  ;;  %s1608_s26 = int_to_ptr.vmem [resolvable:$false] %s1607_s26 }
 0x524   : > { %v559_v44 = vpop.xlane.xlu0 %558 }
 0x525   : > { %1563 = vrcp.f32 %v559_v44 }
 0x52d   : > { %v672_v45 = vpop.xlane.xlu1 %671 }
 0x52e   : > { %1565 = vrcp.f32 %v672_v45 }
 0x52f   : > { %v1564_v15 = vpop.eup %1563 }
 0x530   : > { %v561_v47 = vmul.f32 %v1564_v15, %v1556_v29  ;;  %v1330_v15 = vld [vmem:[%s2058_s2] ss:$0 sm:$0xff] }
 0x531   : > { %v677_v50 = vpop.permute.xlu1 %676 }
 0x532   : > { %v562_v51 = vpack.c.bf16 %v561_v47, %v561_v47  ;;  %v682_v53 = vsel %vm569_vm9, %v677_v50, 0  ;;  %v1546_v50 = vld [vmem:[%s2062_s6 + $0x8] sm:$0xff]  }
 0x535   : > { %v782_v46 = vpop.xlane.xlu0 %781 }
 0x536   : > { %1567 = vrcp.f32 %v782_v46 }
 0x538   : > { %v1566_v52 = vpop.eup %1565 }
 0x539   : > { %v565_v48 = vpop.permute.xlu0 %564  ;;  %v674_v54 = vmul.f32 %v1566_v52, %v1558_v34  ;;  %v1548_v52 = vld [vmem:[%s2062_s6 + $0x18] sm:$0xff]  }
 0x53a   : > { %v571_v49 = vsel %vm569_vm9, %v565_v48, 0 }
 0x53b   : > { %1394 = vmatpush3.bf16.msra.mxu0 %v571_v49  ;;  %v675_v55 = vpack.c.bf16 %v674_v54, %v674_v54  ;;  %v1545_v49 = vld [vmem:[%s2062_s6] sm:$0xff]   ;;  %v1550_v54 = vld [vmem:[%s2062_s6 + $0x28] sm:$0xff]  }
 0x53c   : > { %1405 = vmatprep.subr.bf16.mxu0 %v1672_v4 }
 0x53d   : > { %v897_v61 = vpop.permute.xlu0 %896 }
 0x53e   : > { %1396 = vmatmul.mubr.msk.bf16.vlgmr.msra.gmra.mrb[8].mxu0 %vm460_vm3, %v562_v51  ;;  %v902_v63 = vsel %vm569_vm9, %v897_v61, 0  ;;  %v1547_v51 = vld [vmem:[%s2062_s6 + $0x10] sm:$0xff]  }
 0x53f   : > { %1406 = vmatpush3.bf16.msra.mxu0 %v682_v53  ;;  %1407 = vmatprep.mubr.msk.bf16.mxu0 %vm1673_vm1, %v1672_v4  ;;  %v1549_v53 = vld [vmem:[%s2062_s6 + $0x20] sm:$0xff]  }
 0x540   : > { %1417 = vmatprep.subr.bf16.mxu0 %v1672_v4  ;;  %v1568_v56 = vpop.eup %1567 }
 0x541   : > { %v784_v58 = vmul.f32 %v1568_v56, %v1560_v36  ;;  %v1552_v56 = vld [vmem:[%s2062_s6 + $0x38] sm:$0xff]  }
 0x543   : > { %v785_v62 = vpack.c.bf16 %v784_v58, %v784_v58 }
 0x546   : > { %1408 = vmatmul.mubr.msk.bf16.vlgmr.msra.gmra.mrb[12].mxu0 %vm460_vm3, %v675_v55  ;;  %v1551_v55 = vld [vmem:[%s2062_s6 + $0x30] sm:$0xff]  }
 0x547   : > { %1419 = vmatprep.mubr.msk.bf16.mxu0 %vm1673_vm1, %v1672_v4 }
 0x562   : > { %v892_v57 = vpop.xlane.xlu1 %891 }
 0x563   : > { %1569 = vrcp.f32 %v892_v57 }
 0x566   : > { %v787_v59 = vpop.permute.xlu1 %786 }
 0x567   : > { %v792_v60 = vsel %vm569_vm9, %v787_v59, 0 }
 0x568   : > { %1418 = vmatpush3.bf16.msra.mxu0 %v792_v60 }
 0x569   : > { %1429 = vmatprep.subr.bf16.mxu0 %v1672_v4 }
 0x56b   : > { %1420 = vmatmul.mubr.msk.bf16.vlgmr.msra.gmra.mrb[16].mxu0 %vm460_vm3, %v785_v62 }
 0x56c   : > { %1430 = vmatpush3.bf16.msra.mxu0 %v902_v63  ;;  %1431 = vmatprep.mubr.msk.bf16.mxu0 %vm1673_vm1, %v1672_v4 }
 0x56d   : > { %v1570_v1 = vpop.eup %1569  ;;  %1064 = vmatprep.subr.bf16.mxu0 %v1541_v38 }
 0x56e   : > { %v894_v2 = vmul.f32 %v1570_v1, %v1562_v42 }
 0x570   : > { %v895_v3 = vpack.c.bf16 %v894_v2, %v894_v2 }
 0x573   : > { %1432 = vmatmul.mubr.msk.bf16.vlgmr.msra.gmra.mrb[20].mxu0 %vm460_vm3, %v895_v3 }
 0x574   : > { %1065 = vmatpush1.bf16.msra.mxu0 %v1539_v39  ;;  %1096 = vmatprep.mubr.bf16.mxu0 %v1693_v41 }
 0x575   : > { %1066 = vmatprep.subr.bf16.mxu0 %v1544_v40 }
 0x611   : > { %v607_v5 = vpop.f32.mrb[8].mxu0 }
 0x612   : > { %v1397_v6 = vpop.f32.mrb[9].mxu0 }
 0x613   : > { %v610_v7 = vpop.f32.mrb[10].mxu0 }
 0x614   : > { %v1398_v8 = vpop.f32.mrb[11].mxu0 }
 0x619   : > { %v718_v9 = vpop.f32.mrb[12].mxu0 }
 0x61a   : > { %945 = vrot.lane.b32.xlu1 %v718_v9, %s1690_s29  ;;  %v1409_v10 = vpop.f32.mrb[13].mxu0  ;;  %s361_s29 = sand.u32 1, %s1661_s14  }
 0x61b   : > { %v721_v11 = vpop.f32.mrb[14].mxu0  ;;  %s1313_s30 = sshll.u32 %s361_s29, 3  ;;  %s1223_s17 = scalar_lea.sflag [#allocation4], %s361_s29 }
 0x61c   : > { %v1410_v12 = vpop.f32.mrb[15].mxu0  ;;  %s363_s12 = scalar_lea.vmem [#allocation5], %s1313_s30  ;;  %s1609_s30 = scalar_lea.vmem %s1608_s26, 256 }
 0x61d   : > { %s1236_s18 = sshll.u32 %s363_s12, 4  ;;  %s2015_s18 = int_to_ptr.vmem [resolvable:$true] %s1236_s18 }
 0x61e   : > { %s1603_s27 = scalar_lea.vmem %s2015_s18, 128  ;;  %p1610_p2 = scmp.lt.s32.totalorder %s2015_s18, %s1608_s26 }
 0x61f   : > { %p1604_p5 = scmp.ne.s32.totalorder %s2015_s18, %s1603_s27  ;;  %p1611_p3 = scmp.lt.s32.totalorder %s1609_s30, %s1603_s27 }
 0x621   : > { %p1605_p10 = pnand %p1604_p5, %p2077_p9  ;;  %p1612_p4 = por %p1611_p3, %p1610_p2 }
 0x623   : > { %p1606_p12 = pneg %p1605_p10 }
 0x625   : > { %p1613_p7 = pnand %p1612_p4, %p1606_p12 }
 0x63e   : > { %v828_v16 = vpop.f32.mrb[16].mxu0 }
 0x63f   : > { %949 = vrot.lane.b32.xlu0 %v828_v16, %s1691_s28  ;;  %v1421_v17 = vpop.f32.mrb[17].mxu0 }
 0x640   : > { %v831_v18 = vpop.f32.mrb[18].mxu0 }
 0x641   : > { %v1422_v19 = vpop.f32.mrb[19].mxu0 }
 0x646   : > { %v938_v20 = vpop.f32.mrb[20].mxu0 }
 0x647   : > { %953 = vrot.lane.b32.xlu1 %v938_v20, %s1692_s20  ;;  %v1433_v21 = vpop.f32.mrb[21].mxu0 }
 0x648   : > { %v941_v22 = vpop.f32.mrb[22].mxu0 }
 0x649   : > { %v1434_v23 = vpop.f32.mrb[23].mxu0 }
 0x68c   : > { %v946_v24 = vpop.permute.xlu1 %945 }
 0x68d   : > { %v956_v26 = vsel %vm460_vm3, %v607_v5, %v946_v24 }
 0x6b1   : > { %v950_v25 = vpop.permute.xlu0 %949 }
 0x6b2   : > { %v957_v27 = vsel %vm464_vm5, %v956_v26, %v950_v25 }
 0x6b9   : > { %v954_v28 = vpop.permute.xlu1 %953 }
 0x6ba   : > { %v958_v29 = vsel %vm468_vm7, %v957_v27, %v954_v28 }
 0x6bb   : > { %v963_v30 = vpack.c.bf16 %v958_v29, %v958_v29 }
 0x6bd   : > { %1440 = vmatmul.mubr.msk.bf16.vlgmr.msra.gmra.mrb[12].mxu1 %vm372_vm0, %v963_v30 }
 0x6be   : > { %1459 = vmatprep.mubr.msk.bf16.mxu1 %vm1673_vm1, %v1672_v4  ;;  %1444 = vmatpush3.bf16.msra.mxu1 %v1545_v49 }
 0x6bf   : > { %1445 = vmatprep.subr.bf16.mxu1 %v1672_v4 }
 0x6c2   : > { %1446 = vmatpush3.bf16.msra.mxu1 %v1546_v50 }
 0x6c3   : > { %1447 = vmatprep.subr.bf16.mxu1 %v1672_v4 }
 0x6c6   : > { %1448 = vmatpush3.bf16.msra.mxu1 %v1547_v51 }
 0x6c7   : > { %1449 = vmatprep.subr.bf16.mxu1 %v1672_v4 }
 0x6ca   : > { %1450 = vmatpush3.bf16.msra.mxu1 %v1548_v52 }
 0x6cb   : > { %1451 = vmatprep.subr.bf16.mxu1 %v1672_v4 }
 0x6ce   : > { %1452 = vmatpush3.bf16.msra.mxu1 %v1549_v53 }
 0x6cf   : > { %1453 = vmatprep.subr.bf16.mxu1 %v1672_v4 }
 0x6d2   : > { %1454 = vmatpush3.bf16.msra.mxu1 %v1550_v54 }
 0x6d3   : > { %1455 = vmatprep.subr.bf16.mxu1 %v1672_v4 }
 0x6d6   : > { %1456 = vmatpush3.bf16.msra.mxu1 %v1551_v55 }
 0x6d7   : > { %1457 = vmatprep.subr.bf16.mxu1 %v1672_v4 }
 0x6da   : > { %1458 = vmatpush3.bf16.msra.mxu1 %v1552_v56 }
 0x790   : > { %v1013_v31 = vpop.f32.mrb[12].mxu1 }
 0x791   : > { %v1954_v32 = vadd.f32 %v1013_v31, %v1838_v0  ;;  %v1441_v33 = vpop.f32.mrb[13].mxu1  ;;  %v1542_v0 = vld [vmem:[%s2061_s5 + $0x10] ss:$8 sps:$4 sm:$0xff]  }
 0x792   : > { %v1016_v34 = vpop.f32.mrb[14].mxu1  ;;  %1067 = vmatpush1.bf16.msra.mxu0 %v1542_v0 }
 0x793   : > { %v1442_v35 = vpop.f32.mrb[15].mxu1  ;;  %v1021_v36 = vmul.f32 %v1954_v32, %v1954_v32 }
 0x795   : > { %v1022_v37 = vsel %vm372_vm0, %v1021_v36, 0.0 }
 0x796   : > { %1023 = vadd.xlane.f32.xlu0 %v1022_v37 }
 0x823   : > { %v1024_v42 = vpop.xlane.xlu0 %1023 }
 0x824   : > { %v1025_v43 = vmul.f32 0.03125, %v1024_v42 }
 0x826   : > { %v1026_v44 = vadd.f32 1e-06, %v1025_v43 }
 0x828   : > { %1571 = vrsqrt.f32 %v1026_v44 }
 0x832   : > { %v1572_v45 = vpop.eup %1571 }
 0x833   : > { %v1028_v46 = vmul.f32 %v1572_v45, %v1954_v32 }
 0x835   : > { %v1035_v47 = vmul.f32 %v1330_v15, %v1028_v46 }
 0x837   : > { %v1040_v48 = vpack.c.bf16 %v1035_v47, %v1035_v47 }
 0x839   : > { %1335 = vmatmul.mubr.msk.bf16.vlgmr.msra.gmra.mrb[24].mxu0 %vm372_vm0, %v1040_v48 }
 0x90c   : > { %v1098_v57 = vpop.f32.mrb[24].mxu0 }
 0x90d   : > { %v1100_v58 = vpop.f32.mrb[25].mxu0 }
 0x90e   : > { %v1105_v59 = vmul.f32 %v1100_v58, %v1100_v58  ;;  %v1102_v60 = vpop.f32.mrb[26].mxu0 }
 0x90f   : > { %v1103_v61 = vpop.f32.mrb[27].mxu0 }
 0x910   : > { %v1106_v62 = vmul.f32 %v1105_v59, %v1100_v58 }
 0x912   : > { %v1107_v63 = vmul.f32 0.044715, %v1106_v62 }
 0x914   : > { %v1108_v1 = vadd.f32 %v1107_v63, %v1100_v58 }
 0x916   : > { %v1109_v2 = vmul.f32 0.7978846, %v1108_v1 }
 0x918   : > { %1573 = vtanh.f32 %v1109_v2 }
 0x922   : > { %v1574_v3 = vpop.eup %1573 }
 0x923   : > { %v1111_v5 = vadd.f32 1.0, %v1574_v3 }
 0x925   : > { %v1112_v4 = vmul.f32 0.5, %v1111_v5 }
 0x927   : > { %v1113_v6 = vmul.f32 %v1112_v4, %v1100_v58 }
 0x929   : > { %v1114_v7 = vmul.f32 %v1113_v6, %v1098_v57 }
 0x92b   : > { %v1131_v8 = vpack.c.bf16 %v1114_v7, %v1114_v7 }
 0x92d   : > { %1460 = vmatmul.mubr.bf16.vlgmr.msra.gmra.mrb[16].mxu1 %v1131_v8 }
 0xa00   : > { %v1214_v9 = vpop.f32.mrb[16].mxu1 }
 0xa01   : > { %v1220_v10 = vadd.f32 %v1214_v9, %v1954_v32  ;;  %v1461_v11 = vpop.f32.mrb[17].mxu1 }
 0xa02   : > { %v1217_v12 = vpop.f32.mrb[18].mxu1 }
 0xa03   : > { %v1462_v13 = vpop.f32.mrb[19].mxu1  ;;  %1221 = vst.msk [vmem:[%s363_s12] sm:$0xff] %vm372_vm0, %v1220_v10 }
 0xa04   : > { %1616 = shalt.err (!%p1613_p7)
}
 0xa05   : > { %s1617_s29 = scalar_lea.hbm %s2013_s25, 128  ;;  %s1621_s28 = scalar_lea.hbm %s2066_s10, 256 }
 0xa06   : > { %p1618_p8 = scmp.ne.s32.totalorder %s2013_s25, %s1617_s29  ;;  %p1622_p1 = scmp.lt.u32.totalorder %s2013_s25, %s2066_s10 }
 0xa07   : > { %p1623_p0 = scmp.lt.u32.totalorder %s1621_s28, %s1617_s29  ;;  %p1625_p5 = scmp.lt.u32.totalorder %s1617_s29, %s2013_s25 }
 0xa08   : > { %p1619_p11 = pnand %p1618_p8, %p2077_p9 }
 0xa09   : > { %p1624_p6 = por %p1623_p0, %p1622_p1 }
 0xa0a   : > { %p1620_p13 = pneg %p1619_p11 }
 0xa0b   : > { %p1626_p10 = por %p1625_p5, %p1624_p6 }
 0xa0d   : > { %p1627_p12 = pnand %p1626_p10, %p1620_p13 }
 0xa0f   : > { %1630 = shalt.err (!%p1627_p12)
}
 0xa10   : > { %1467 = dma.vmem_to_hbm [thread:$0]  (%p2077_p9), %s2015_s18, 128, %s2013_s25, %s1223_s17  }
 0xa11 PF: > { %p1479_p2 = scmp.ge.s32.totalorder %s1669_s16, 2  ;;  %s1248_s27 = sand.u32 1, %s1657_s13  }
 0xa12   : > { %p2078_p3 = scmp.ne.s32.totalorder %s2071_s24, 0  ;;  %s1249_s26 = scalar_lea.sflag [#allocation4], %s1248_s27 }
 0xa14   : > { %p1474_p4 = pnand %p1479_p2, %p2078_p3 }
 0xa16   : > { %1652 = dma.done.wait (!%p1474_p4), %s1249_s26, 128  }
 0xa17   : > { %1654 = vsyncadd (!%p1474_p4), %s1249_s26, 4294967168  ;;  %p21_p7 = scmp.ge.s32.totalorder %s1775_s19, 4   ;;  %s2079_s13 = smov %s1661_s14 }
 0xa18   : > { %s2080_s14 = smov %s1665_s15  ;;  %s2081_s15 = smov %s1786_s22 }
 0xa19   : > { %s2082_s16 = smov %s1775_s19  ;;  %23 = sbr.rel (!%p21_p7) target bundleno = 4 (0x4), region = 100 }
 0xa20   :  { %1254 = vsyncpa [#allocation3], 1 }
 0xa21   :  { %1256 = vsyncpa [#allocation3 + $0x1], 1 }
 0xa22   :  { %1257 = vsyncpa [#allocation4], 1 }
 0xa23   :  { %1259 = vsyncpa [#allocation4 + $0x1], 1 }

</bundles_post_ra>
